<compile_context>
chip_gen: v6e
topology: v6e:2x2x1
jax: 0.10.0
libtpu: 0.0.40
codegen_flags: <defaults>
</compile_context>

<pallas_src>
import jax
import jax.numpy as jnp
from jax import lax
from jax.experimental import pallas as pl
from jax.experimental.pallas import tpu as pltpu


def make_bilstm_kernel(T, B, H):
    H2 = 2 * H      # fused [fwd | bwd] hidden / cell width
    G = 8 * H       # 4 gates x 2 directions; gate-major (i,f,o,g), direction-minor

    def kernel(emb_ref, wih_ref, b_ref, whh_ref, wout_ref, bout_ref,
               out_ref, h_seq):
        # ---- Hoisted input projection: one bf16 MXU matmul (f32 acc) for both
        # directions and all timesteps.
        gin = (jnp.dot(emb_ref[...], wih_ref[...],
                       preferred_element_type=jnp.float32)
               + b_ref[...])                                        # (T*B, 8H) f32

        # Columns belonging to the forward direction within each 2H-wide gate block.
        lane = lax.broadcasted_iota(jnp.int32, (B, G), 1)
        fwd_lane = (lane % H2) < H

        whh = whh_ref[...]                 # (2H, 8H) bf16 block-diagonal recurrent weight

        h = jnp.zeros((B, H2), jnp.float32)    # [h_fwd | h_bwd]
        c = jnp.zeros((B, H2), jnp.float32)    # [c_fwd | c_bwd]

        # ---- Fused fwd+bwd recurrence, fully unrolled (T static & small).
        for s in range(T):
            tb = T - 1 - s
            # forward columns read the precomputed input gates at time s,
            # backward columns at time T-1-s (single VPU select, no per-step matmul).
            gin_s = jnp.where(fwd_lane,
                              gin[s * B:(s + 1) * B, :],
                              gin[tb * B:(tb + 1) * B, :])          # (B, 8H)
            gates = jnp.dot(h.astype(jnp.bfloat16), whh,
                            preferred_element_type=jnp.float32) + gin_s
            # Per-gate activations: sigmoid on i,f,o (first 3*2H cols), tanh on g (last 2H).
            sig = jax.nn.sigmoid(gates[:, 0:3 * H2])
            i_g = sig[:, 0 * H2:1 * H2]
            f_g = sig[:, 1 * H2:2 * H2]
            o_g = sig[:, 2 * H2:3 * H2]
            g_g = jnp.tanh(gates[:, 3 * H2:4 * H2])
            c = f_g * c + i_g * g_g
            h = o_g * jnp.tanh(c)
            # Write straight into the flat (T*B, 2H) hidden-sequence buffer.
            h_seq[s * B:(s + 1) * B, 0:H] = h[:, 0:H]       # forward hidden at time s
            h_seq[tb * B:(tb + 1) * B, H:H2] = h[:, H:H2]   # backward hidden at time T-1-s

        # ---- Epilogue: single bf16 output matmul (f32 acc) + exact stable softmax.
        logits = (jnp.dot(h_seq[...].astype(jnp.bfloat16), wout_ref[...],
                          preferred_element_type=jnp.float32)
                  + bout_ref[...])                                   # (T*B, O)
        m = jnp.max(logits, axis=-1, keepdims=True)
        e = jnp.exp(logits - m)
        out_ref[...] = e / jnp.sum(e, axis=-1, keepdims=True)        # exact normalization

    return kernel


# PyTorch gate order (i, f, g, o) -> kernel gate order (i, f, o, g): g last so the
# kernel applies tanh to one contiguous trailing block and sigmoid to the rest.
_KERNEL_GATE_ORDER = (0, 1, 3, 2)


def pack_params(params):
    """One-time packing of per-direction PyTorch-layout weights into the fused kernel
    layout (gate-major / direction-minor columns, block-diagonal recurrent weight),
    with matmul weights pre-cast to bf16 (biases stay f32)."""
    H = params["whh_f"].shape[0]

    def gate_major(wf, wb):
        # (.., 4H) x 2 -> (.., 8H): [i_f i_b | f_f f_b | o_f o_b | g_f g_b]
        cols = []
        for k in _KERNEL_GATE_ORDER:
            cols.append(wf[..., k * H:(k + 1) * H])
            cols.append(wb[..., k * H:(k + 1) * H])
        return jnp.concatenate(cols, axis=-1)

    wih_c = gate_major(params["wih_f"], params["wih_b"])      # (E, 8H)
    b_c = gate_major(params["b_f"], params["b_b"])            # (1, 8H)

    # Block-diagonal recurrent weight: rows [0:H) act on h_fwd, rows [H:2H) on h_bwd.
    whh_c = jnp.zeros((2 * H, 8 * H), jnp.float32)
    for j, k in enumerate(_KERNEL_GATE_ORDER):
        whh_c = whh_c.at[0:H, j * 2 * H:j * 2 * H + H].set(
            params["whh_f"][:, k * H:(k + 1) * H])
        whh_c = whh_c.at[H:2 * H, j * 2 * H + H:(j + 1) * 2 * H].set(
            params["whh_b"][:, k * H:(k + 1) * H])

    return {
        "emb_table": params["emb_table"],                     # f32 (gathered, cast later)
        "wih_c": wih_c.astype(jnp.bfloat16),
        "b_c": b_c,                                           # f32 bias
        "whh_c": whh_c.astype(jnp.bfloat16),
        "w_out": params["w_out"].astype(jnp.bfloat16),
        "b_out": params["b_out"],                             # f32 bias
    }


@jax.jit
def bilstm_forward(x_tokens, packed):
    """x_tokens: (B, T) int32 token ids. Returns (B, T, out_size) softmax probs."""
    B, T = x_tokens.shape
    H2 = packed["whh_c"].shape[0]
    H = H2 // 2
    O = packed["w_out"].shape[1]

    # Embedding gather + time-major flatten + bf16 cast are XLA glue around the kernel.
    emb = packed["emb_table"][x_tokens]                               # (B, T, E) f32
    emb_flat = (jnp.transpose(emb, (1, 0, 2))
                .reshape(T * B, -1)
                .astype(jnp.bfloat16))                                # (T*B, E) bf16

    vmem = pl.BlockSpec(memory_space=pltpu.MemorySpace.VMEM)
    out_flat = pl.pallas_call(
        make_bilstm_kernel(T, B, H),
        out_shape=jax.ShapeDtypeStruct((T * B, O), jnp.float32),
        in_specs=[vmem] * 6,
        out_specs=vmem,
        scratch_shapes=[pltpu.VMEM((T * B, H2), jnp.float32)],        # flat [h_fwd | h_bwd]
    )(emb_flat, packed["wih_c"], packed["b_c"], packed["whh_c"],
      packed["w_out"], packed["b_out"])

    return jnp.transpose(out_flat.reshape(T, B, O), (1, 0, 2))        # (B, T, O)


def make_params(key, voc_size, emb_size, hid_size, out_size):
    ks = jax.random.split(key, 12)
    s = 1.0 / jnp.sqrt(hid_size)

    def u(k, shape):
        return jax.random.uniform(k, shape, jnp.float32, -s, s)

    return {
        "emb_table": jax.random.normal(ks[0], (voc_size, emb_size), jnp.float32),
        # forward direction (PyTorch weight_ih_l0 is (4H, E); we store transposed)
        "wih_f": u(ks[1], (emb_size, 4 * hid_size)),
        "whh_f": u(ks[2], (hid_size, 4 * hid_size)),
        "b_f":   u(ks[3], (1, 4 * hid_size)) + u(ks[4], (1, 4 * hid_size)),  # b_ih + b_hh
        # reverse direction
        "wih_b": u(ks[5], (emb_size, 4 * hid_size)),
        "whh_b": u(ks[6], (hid_size, 4 * hid_size)),
        "b_b":   u(ks[7], (1, 4 * hid_size)) + u(ks[8], (1, 4 * hid_size)),
        # output linear (PyTorch weight is (O, 2H); stored transposed)
        "w_out": u(ks[9], (2 * hid_size, out_size)),
        "b_out": u(ks[10], (1, out_size)),
    }


def reference_forward(x_tokens, params, mxu_dtype=jnp.float32):
    """Pure-JAX reference matching torch.nn.LSTM(bidirectional) semantics.
    mxu_dtype=jnp.bfloat16 mirrors the kernel's matmul-operand precision (f32 accum)."""
    emb = params["emb_table"][x_tokens].astype(jnp.float32)   # (B, T, E)
    B, T, _ = emb.shape
    H = params["whh_f"].shape[0]

    def mm(a, b):
        return jnp.dot(a.astype(mxu_dtype), b.astype(mxu_dtype),
                       preferred_element_type=jnp.float32)

    def run_dir(seq_tbe, wih, whh, b):
        def step(carry, x_t):
            h, c = carry
            gates = mm(x_t, wih) + mm(h, whh) + b
            i = jax.nn.sigmoid(gates[:, 0 * H:1 * H])
            f = jax.nn.sigmoid(gates[:, 1 * H:2 * H])
            g = jnp.tanh(gates[:, 2 * H:3 * H])
            o = jax.nn.sigmoid(gates[:, 3 * H:4 * H])
            c = f * c + i * g
            h = o * jnp.tanh(c)
            return (h, c), h
        z = jnp.zeros((B, H), jnp.float32)
        _, hs = lax.scan(step, (z, z), seq_tbe)
        return hs                                             # (T, B, H)

    emb_tbe = jnp.transpose(emb, (1, 0, 2))
    hf = run_dir(emb_tbe, params["wih_f"], params["whh_f"], params["b_f"])
    hb = run_dir(emb_tbe[::-1], params["wih_b"], params["whh_b"], params["b_b"])[::-1]
    h2 = jnp.concatenate([hf, hb], axis=-1)                   # (T, B, 2H)
    logits = mm(h2, params["w_out"]) + params["b_out"]        # (T, B, O)
    probs = jax.nn.softmax(logits, axis=-1)
    return jnp.transpose(probs, (1, 0, 2))                    # (B, T, O)


if __name__ == "__main__":
    VOC, EMB, HID, OUT = 20, 16, 32, 8
    B, T = 2, 8

    key = jax.random.PRNGKey(0)
    k_param, k_tok = jax.random.split(key)
    params = make_params(k_param, VOC, EMB, HID, OUT)
    packed = pack_params(params)                 # one-time packing (hoisted out of fwd)
    x = jax.random.randint(k_tok, (B, T), 0, VOC, dtype=jnp.int32)

    out = jax.block_until_ready(bilstm_forward(x, packed))
    ref_f32 = jax.block_until_ready(reference_forward(x, params))
    ref_mixed = jax.block_until_ready(
        reference_forward(x, params, mxu_dtype=jnp.bfloat16))

    assert out.shape == (B, T, OUT)
    # Tight check: kernel matches a reference with identical bf16-operand / f32-accum math.
    assert jnp.allclose(out, ref_mixed, atol=2e-3, rtol=2e-3)
    # Semantic check: kernel stays within mixed-precision tolerance of the pure-f32 module.
    assert jnp.allclose(out, ref_f32, atol=2e-2, rtol=2e-2)
    # Exact softmax normalization (exact division in the epilogue, no approx reciprocal).
    assert jnp.allclose(out.sum(-1), jnp.ones((B, T)), atol=1e-5)

    print("KERNEL_OK")
</pallas_src>

<mosaic_0001>
module attributes {stable_mosaic.version = 11 : i64} {
  func.func @kernel(%arg0: memref<16x16xbf16, #tpu.memory_space<vmem>>, %arg1: memref<16x256xbf16, #tpu.memory_space<vmem>>, %arg2: memref<1x256xf32, #tpu.memory_space<vmem>>, %arg3: memref<64x256xbf16, #tpu.memory_space<vmem>>, %arg4: memref<64x8xbf16, #tpu.memory_space<vmem>>, %arg5: memref<1x8xf32, #tpu.memory_space<vmem>>, %arg6: memref<16x8xf32, #tpu.memory_space<vmem>>, %arg7: memref<16x64xf32, #tpu.memory_space<vmem>>) attributes {dimension_semantics = [], scalar_prefetch = 0 : i64, scratch_operands = 1 : i64, tpu.core_type = #tpu.core_type<tc>} {
    %c0 = arith.constant 0 : index
    %c0_0 = arith.constant 0 : index
    %0 = vector.load %arg0[%c0, %c0_0] : memref<16x16xbf16, #tpu.memory_space<vmem>>, vector<16x16xbf16>
    %c0_1 = arith.constant 0 : index
    %c0_2 = arith.constant 0 : index
    %1 = vector.load %arg1[%c0_1, %c0_2] : memref<16x256xbf16, #tpu.memory_space<vmem>>, vector<16x256xbf16>
    %cst = arith.constant dense<0.000000e+00> : vector<16x256xf32>
    %2 = tpu.matmul %0, %1, %cst {dimension_numbers = #tpu.dot_dimension_numbers<[1], [0], [0], [1], [0, 0, 1, 1], [], []>} : vector<16x16xbf16>, vector<16x256xbf16>, vector<16x256xf32> -> vector<16x256xf32>
    %c0_3 = arith.constant 0 : index
    %c0_4 = arith.constant 0 : index
    %3 = vector.load %arg2[%c0_3, %c0_4] : memref<1x256xf32, #tpu.memory_space<vmem>>, vector<1x256xf32>
    %4 = vector.broadcast %3 : vector<1x256xf32> to vector<16x256xf32>
    %5 = arith.addf %2, %4 : vector<16x256xf32>
    %6 = tpu.iota {dimensions = array<i32: 1>} : vector<2x256xi32>
    %c64_i32 = arith.constant 64 : i32
    %c0_i32 = arith.constant 0 : i32
    %7 = arith.cmpi eq, %c64_i32, %c0_i32 : i32
    %c1_i32 = arith.constant 1 : i32
    %8 = arith.select %7, %c1_i32, %c64_i32 : i32
    %9 = vector.broadcast %8 : i32 to vector<2x256xi32>
    %10 = arith.remsi %6, %9 : vector<2x256xi32>
    %c0_i32_5 = arith.constant 0 : i32
    %11 = vector.broadcast %c0_i32_5 : i32 to vector<2x256xi32>
    %12 = arith.cmpi ne, %10, %11 : vector<2x256xi32>
    %c0_i32_6 = arith.constant 0 : i32
    %13 = vector.broadcast %c0_i32_6 : i32 to vector<2x256xi32>
    %14 = arith.cmpi slt, %10, %13 : vector<2x256xi32>
    %c0_i32_7 = arith.constant 0 : i32
    %15 = arith.cmpi slt, %8, %c0_i32_7 : i32
    %16 = vector.broadcast %15 : i1 to vector<2x256xi1>
    %17 = vector.broadcast %16 : vector<2x256xi1> to vector<2x256xi1>
    %18 = arith.xori %14, %17 : vector<2x256xi1>
    %19 = arith.andi %18, %12 : vector<2x256xi1>
    %20 = vector.broadcast %8 : i32 to vector<2x256xi32>
    %21 = arith.addi %10, %20 : vector<2x256xi32>
    %22 = arith.select %19, %21, %10 : vector<2x256xi1>, vector<2x256xi32>
    %c32_i32 = arith.constant 32 : i32
    %23 = vector.broadcast %c32_i32 : i32 to vector<2x256xi32>
    %24 = arith.cmpi slt, %22, %23 : vector<2x256xi32>
    %c0_8 = arith.constant 0 : index
    %c0_9 = arith.constant 0 : index
    %25 = vector.load %arg3[%c0_8, %c0_9] : memref<64x256xbf16, #tpu.memory_space<vmem>>, vector<64x256xbf16>
    %cst_10 = arith.constant 0.000000e+00 : f32
    %26 = vector.broadcast %cst_10 : f32 to vector<2x64xf32>
    %cst_11 = arith.constant 0.000000e+00 : f32
    %27 = vector.broadcast %cst_11 : f32 to vector<2x64xf32>
    %28 = vector.extract_strided_slice %5 {offsets = [0, 0], sizes = [2, 256], strides = [1, 1]} : vector<16x256xf32> to vector<2x256xf32>
    %29 = vector.extract_strided_slice %5 {offsets = [14, 0], sizes = [2, 256], strides = [1, 1]} : vector<16x256xf32> to vector<2x256xf32>
    %30 = arith.select %24, %28, %29 : vector<2x256xi1>, vector<2x256xf32>
    %31 = arith.truncf %26 : vector<2x64xf32> to vector<2x64xbf16>
    %cst_12 = arith.constant dense<0.000000e+00> : vector<2x256xf32>
    %32 = tpu.matmul %31, %25, %cst_12 {dimension_numbers = #tpu.dot_dimension_numbers<[1], [0], [0], [1], [0, 0, 1, 1], [], []>} : vector<2x64xbf16>, vector<64x256xbf16>, vector<2x256xf32> -> vector<2x256xf32>
    %33 = arith.addf %32, %30 : vector<2x256xf32>
    %34 = vector.extract_strided_slice %33 {offsets = [0, 0], sizes = [2, 192], strides = [1, 1]} : vector<2x256xf32> to vector<2x192xf32>
    %35 = arith.negf %34 : vector<2x192xf32>
    %36 = math.exp %35 : vector<2x192xf32>
    %cst_13 = arith.constant 1.000000e+00 : f32
    %37 = vector.broadcast %cst_13 : f32 to vector<2x192xf32>
    %38 = arith.addf %37, %36 : vector<2x192xf32>
    %39 = arith.divf %37, %38 : vector<2x192xf32>
    %40 = vector.extract_strided_slice %39 {offsets = [0, 0], sizes = [2, 64], strides = [1, 1]} : vector<2x192xf32> to vector<2x64xf32>
    %41 = vector.extract_strided_slice %39 {offsets = [0, 64], sizes = [2, 64], strides = [1, 1]} : vector<2x192xf32> to vector<2x64xf32>
    %42 = vector.extract_strided_slice %39 {offsets = [0, 128], sizes = [2, 64], strides = [1, 1]} : vector<2x192xf32> to vector<2x64xf32>
    %43 = vector.extract_strided_slice %33 {offsets = [0, 192], sizes = [2, 64], strides = [1, 1]} : vector<2x256xf32> to vector<2x64xf32>
    %44 = math.tanh %43 : vector<2x64xf32>
    %45 = arith.mulf %41, %27 : vector<2x64xf32>
    %46 = arith.mulf %40, %44 : vector<2x64xf32>
    %47 = arith.addf %45, %46 : vector<2x64xf32>
    %48 = math.tanh %47 : vector<2x64xf32>
    %49 = arith.mulf %42, %48 : vector<2x64xf32>
    %50 = vector.extract_strided_slice %49 {offsets = [0, 0], sizes = [2, 32], strides = [1, 1]} : vector<2x64xf32> to vector<2x32xf32>
    %c0_14 = arith.constant 0 : index
    %c0_15 = arith.constant 0 : index
    %51 = vector.load %arg7[%c0_14, %c0_15] : memref<16x64xf32, #tpu.memory_space<vmem>>, vector<2x32xf32>
    tpu.vector_store %arg7[%c0_14, %c0_15], %50 {strides = array<i32>} : memref<16x64xf32, #tpu.memory_space<vmem>>, vector<2x32xf32>,
    %52 = vector.extract_strided_slice %49 {offsets = [0, 32], sizes = [2, 32], strides = [1, 1]} : vector<2x64xf32> to vector<2x32xf32>
    %c14 = arith.constant 14 : index
    %c32 = arith.constant 32 : index
    %53 = vector.load %arg7[%c14, %c32] : memref<16x64xf32, #tpu.memory_space<vmem>>, vector<2x32xf32>
    tpu.vector_store %arg7[%c14, %c32], %52 {strides = array<i32>} : memref<16x64xf32, #tpu.memory_space<vmem>>, vector<2x32xf32>,
    %54 = vector.extract_strided_slice %5 {offsets = [2, 0], sizes = [2, 256], strides = [1, 1]} : vector<16x256xf32> to vector<2x256xf32>
    %55 = vector.extract_strided_slice %5 {offsets = [12, 0], sizes = [2, 256], strides = [1, 1]} : vector<16x256xf32> to vector<2x256xf32>
    %56 = arith.select %24, %54, %55 : vector<2x256xi1>, vector<2x256xf32>
    %57 = arith.truncf %49 : vector<2x64xf32> to vector<2x64xbf16>
    %cst_16 = arith.constant dense<0.000000e+00> : vector<2x256xf32>
    %58 = tpu.matmul %57, %25, %cst_16 {dimension_numbers = #tpu.dot_dimension_numbers<[1], [0], [0], [1], [0, 0, 1, 1], [], []>} : vector<2x64xbf16>, vector<64x256xbf16>, vector<2x256xf32> -> vector<2x256xf32>
    %59 = arith.addf %58, %56 : vector<2x256xf32>
    %60 = vector.extract_strided_slice %59 {offsets = [0, 0], sizes = [2, 192], strides = [1, 1]} : vector<2x256xf32> to vector<2x192xf32>
    %61 = arith.negf %60 : vector<2x192xf32>
    %62 = math.exp %61 : vector<2x192xf32>
    %cst_17 = arith.constant 1.000000e+00 : f32
    %63 = vector.broadcast %cst_17 : f32 to vector<2x192xf32>
    %64 = arith.addf %63, %62 : vector<2x192xf32>
    %65 = arith.divf %63, %64 : vector<2x192xf32>
    %66 = vector.extract_strided_slice %65 {offsets = [0, 0], sizes = [2, 64], strides = [1, 1]} : vector<2x192xf32> to vector<2x64xf32>
    %67 = vector.extract_strided_slice %65 {offsets = [0, 64], sizes = [2, 64], strides = [1, 1]} : vector<2x192xf32> to vector<2x64xf32>
    %68 = vector.extract_strided_slice %65 {offsets = [0, 128], sizes = [2, 64], strides = [1, 1]} : vector<2x192xf32> to vector<2x64xf32>
    %69 = vector.extract_strided_slice %59 {offsets = [0, 192], sizes = [2, 64], strides = [1, 1]} : vector<2x256xf32> to vector<2x64xf32>
    %70 = math.tanh %69 : vector<2x64xf32>
    %71 = arith.mulf %67, %47 : vector<2x64xf32>
    %72 = arith.mulf %66, %70 : vector<2x64xf32>
    %73 = arith.addf %71, %72 : vector<2x64xf32>
    %74 = math.tanh %73 : vector<2x64xf32>
    %75 = arith.mulf %68, %74 : vector<2x64xf32>
    %76 = vector.extract_strided_slice %75 {offsets = [0, 0], sizes = [2, 32], strides = [1, 1]} : vector<2x64xf32> to vector<2x32xf32>
    %c2 = arith.constant 2 : index
    %c0_18 = arith.constant 0 : index
    %77 = vector.load %arg7[%c2, %c0_18] : memref<16x64xf32, #tpu.memory_space<vmem>>, vector<2x32xf32>
    tpu.vector_store %arg7[%c2, %c0_18], %76 {strides = array<i32>} : memref<16x64xf32, #tpu.memory_space<vmem>>, vector<2x32xf32>,
    %78 = vector.extract_strided_slice %75 {offsets = [0, 32], sizes = [2, 32], strides = [1, 1]} : vector<2x64xf32> to vector<2x32xf32>
    %c12 = arith.constant 12 : index
    %c32_19 = arith.constant 32 : index
    %79 = vector.load %arg7[%c12, %c32_19] : memref<16x64xf32, #tpu.memory_space<vmem>>, vector<2x32xf32>
    tpu.vector_store %arg7[%c12, %c32_19], %78 {strides = array<i32>} : memref<16x64xf32, #tpu.memory_space<vmem>>, vector<2x32xf32>,
    %80 = vector.extract_strided_slice %5 {offsets = [4, 0], sizes = [2, 256], strides = [1, 1]} : vector<16x256xf32> to vector<2x256xf32>
    %81 = vector.extract_strided_slice %5 {offsets = [10, 0], sizes = [2, 256], strides = [1, 1]} : vector<16x256xf32> to vector<2x256xf32>
    %82 = arith.select %24, %80, %81 : vector<2x256xi1>, vector<2x256xf32>
    %83 = arith.truncf %75 : vector<2x64xf32> to vector<2x64xbf16>
    %cst_20 = arith.constant dense<0.000000e+00> : vector<2x256xf32>
    %84 = tpu.matmul %83, %25, %cst_20 {dimension_numbers = #tpu.dot_dimension_numbers<[1], [0], [0], [1], [0, 0, 1, 1], [], []>} : vector<2x64xbf16>, vector<64x256xbf16>, vector<2x256xf32> -> vector<2x256xf32>
    %85 = arith.addf %84, %82 : vector<2x256xf32>
    %86 = vector.extract_strided_slice %85 {offsets = [0, 0], sizes = [2, 192], strides = [1, 1]} : vector<2x256xf32> to vector<2x192xf32>
    %87 = arith.negf %86 : vector<2x192xf32>
    %88 = math.exp %87 : vector<2x192xf32>
    %cst_21 = arith.constant 1.000000e+00 : f32
    %89 = vector.broadcast %cst_21 : f32 to vector<2x192xf32>
    %90 = arith.addf %89, %88 : vector<2x192xf32>
    %91 = arith.divf %89, %90 : vector<2x192xf32>
    %92 = vector.extract_strided_slice %91 {offsets = [0, 0], sizes = [2, 64], strides = [1, 1]} : vector<2x192xf32> to vector<2x64xf32>
    %93 = vector.extract_strided_slice %91 {offsets = [0, 64], sizes = [2, 64], strides = [1, 1]} : vector<2x192xf32> to vector<2x64xf32>
    %94 = vector.extract_strided_slice %91 {offsets = [0, 128], sizes = [2, 64], strides = [1, 1]} : vector<2x192xf32> to vector<2x64xf32>
    %95 = vector.extract_strided_slice %85 {offsets = [0, 192], sizes = [2, 64], strides = [1, 1]} : vector<2x256xf32> to vector<2x64xf32>
    %96 = math.tanh %95 : vector<2x64xf32>
    %97 = arith.mulf %93, %73 : vector<2x64xf32>
    %98 = arith.mulf %92, %96 : vector<2x64xf32>
    %99 = arith.addf %97, %98 : vector<2x64xf32>
    %100 = math.tanh %99 : vector<2x64xf32>
    %101 = arith.mulf %94, %100 : vector<2x64xf32>
    %102 = vector.extract_strided_slice %101 {offsets = [0, 0], sizes = [2, 32], strides = [1, 1]} : vector<2x64xf32> to vector<2x32xf32>
    %c4 = arith.constant 4 : index
    %c0_22 = arith.constant 0 : index
    %103 = vector.load %arg7[%c4, %c0_22] : memref<16x64xf32, #tpu.memory_space<vmem>>, vector<2x32xf32>
    tpu.vector_store %arg7[%c4, %c0_22], %102 {strides = array<i32>} : memref<16x64xf32, #tpu.memory_space<vmem>>, vector<2x32xf32>,
    %104 = vector.extract_strided_slice %101 {offsets = [0, 32], sizes = [2, 32], strides = [1, 1]} : vector<2x64xf32> to vector<2x32xf32>
    %c10 = arith.constant 10 : index
    %c32_23 = arith.constant 32 : index
    %105 = vector.load %arg7[%c10, %c32_23] : memref<16x64xf32, #tpu.memory_space<vmem>>, vector<2x32xf32>
    tpu.vector_store %arg7[%c10, %c32_23], %104 {strides = array<i32>} : memref<16x64xf32, #tpu.memory_space<vmem>>, vector<2x32xf32>,
    %106 = vector.extract_strided_slice %5 {offsets = [6, 0], sizes = [2, 256], strides = [1, 1]} : vector<16x256xf32> to vector<2x256xf32>
    %107 = vector.extract_strided_slice %5 {offsets = [8, 0], sizes = [2, 256], strides = [1, 1]} : vector<16x256xf32> to vector<2x256xf32>
    %108 = arith.select %24, %106, %107 : vector<2x256xi1>, vector<2x256xf32>
    %109 = arith.truncf %101 : vector<2x64xf32> to vector<2x64xbf16>
    %cst_24 = arith.constant dense<0.000000e+00> : vector<2x256xf32>
    %110 = tpu.matmul %109, %25, %cst_24 {dimension_numbers = #tpu.dot_dimension_numbers<[1], [0], [0], [1], [0, 0, 1, 1], [], []>} : vector<2x64xbf16>, vector<64x256xbf16>, vector<2x256xf32> -> vector<2x256xf32>
    %111 = arith.addf %110, %108 : vector<2x256xf32>
    %112 = vector.extract_strided_slice %111 {offsets = [0, 0], sizes = [2, 192], strides = [1, 1]} : vector<2x256xf32> to vector<2x192xf32>
    %113 = arith.negf %112 : vector<2x192xf32>
    %114 = math.exp %113 : vector<2x192xf32>
    %cst_25 = arith.constant 1.000000e+00 : f32
    %115 = vector.broadcast %cst_25 : f32 to vector<2x192xf32>
    %116 = arith.addf %115, %114 : vector<2x192xf32>
    %117 = arith.divf %115, %116 : vector<2x192xf32>
    %118 = vector.extract_strided_slice %117 {offsets = [0, 0], sizes = [2, 64], strides = [1, 1]} : vector<2x192xf32> to vector<2x64xf32>
    %119 = vector.extract_strided_slice %117 {offsets = [0, 64], sizes = [2, 64], strides = [1, 1]} : vector<2x192xf32> to vector<2x64xf32>
    %120 = vector.extract_strided_slice %117 {offsets = [0, 128], sizes = [2, 64], strides = [1, 1]} : vector<2x192xf32> to vector<2x64xf32>
    %121 = vector.extract_strided_slice %111 {offsets = [0, 192], sizes = [2, 64], strides = [1, 1]} : vector<2x256xf32> to vector<2x64xf32>
    %122 = math.tanh %121 : vector<2x64xf32>
    %123 = arith.mulf %119, %99 : vector<2x64xf32>
    %124 = arith.mulf %118, %122 : vector<2x64xf32>
    %125 = arith.addf %123, %124 : vector<2x64xf32>
    %126 = math.tanh %125 : vector<2x64xf32>
    %127 = arith.mulf %120, %126 : vector<2x64xf32>
    %128 = vector.extract_strided_slice %127 {offsets = [0, 0], sizes = [2, 32], strides = [1, 1]} : vector<2x64xf32> to vector<2x32xf32>
    %c6 = arith.constant 6 : index
    %c0_26 = arith.constant 0 : index
    %129 = vector.load %arg7[%c6, %c0_26] : memref<16x64xf32, #tpu.memory_space<vmem>>, vector<2x32xf32>
    tpu.vector_store %arg7[%c6, %c0_26], %128 {strides = array<i32>} : memref<16x64xf32, #tpu.memory_space<vmem>>, vector<2x32xf32>,
    %130 = vector.extract_strided_slice %127 {offsets = [0, 32], sizes = [2, 32], strides = [1, 1]} : vector<2x64xf32> to vector<2x32xf32>
    %c8 = arith.constant 8 : index
    %c32_27 = arith.constant 32 : index
    %131 = vector.load %arg7[%c8, %c32_27] : memref<16x64xf32, #tpu.memory_space<vmem>>, vector<2x32xf32>
    tpu.vector_store %arg7[%c8, %c32_27], %130 {strides = array<i32>} : memref<16x64xf32, #tpu.memory_space<vmem>>, vector<2x32xf32>,
    %132 = vector.extract_strided_slice %5 {offsets = [8, 0], sizes = [2, 256], strides = [1, 1]} : vector<16x256xf32> to vector<2x256xf32>
    %133 = vector.extract_strided_slice %5 {offsets = [6, 0], sizes = [2, 256], strides = [1, 1]} : vector<16x256xf32> to vector<2x256xf32>
    %134 = arith.select %24, %132, %133 : vector<2x256xi1>, vector<2x256xf32>
    %135 = arith.truncf %127 : vector<2x64xf32> to vector<2x64xbf16>
    %cst_28 = arith.constant dense<0.000000e+00> : vector<2x256xf32>
    %136 = tpu.matmul %135, %25, %cst_28 {dimension_numbers = #tpu.dot_dimension_numbers<[1], [0], [0], [1], [0, 0, 1, 1], [], []>} : vector<2x64xbf16>, vector<64x256xbf16>, vector<2x256xf32> -> vector<2x256xf32>
    %137 = arith.addf %136, %134 : vector<2x256xf32>
    %138 = vector.extract_strided_slice %137 {offsets = [0, 0], sizes = [2, 192], strides = [1, 1]} : vector<2x256xf32> to vector<2x192xf32>
    %139 = arith.negf %138 : vector<2x192xf32>
    %140 = math.exp %139 : vector<2x192xf32>
    %cst_29 = arith.constant 1.000000e+00 : f32
    %141 = vector.broadcast %cst_29 : f32 to vector<2x192xf32>
    %142 = arith.addf %141, %140 : vector<2x192xf32>
    %143 = arith.divf %141, %142 : vector<2x192xf32>
    %144 = vector.extract_strided_slice %143 {offsets = [0, 0], sizes = [2, 64], strides = [1, 1]} : vector<2x192xf32> to vector<2x64xf32>
    %145 = vector.extract_strided_slice %143 {offsets = [0, 64], sizes = [2, 64], strides = [1, 1]} : vector<2x192xf32> to vector<2x64xf32>
    %146 = vector.extract_strided_slice %143 {offsets = [0, 128], sizes = [2, 64], strides = [1, 1]} : vector<2x192xf32> to vector<2x64xf32>
    %147 = vector.extract_strided_slice %137 {offsets = [0, 192], sizes = [2, 64], strides = [1, 1]} : vector<2x256xf32> to vector<2x64xf32>
    %148 = math.tanh %147 : vector<2x64xf32>
    %149 = arith.mulf %145, %125 : vector<2x64xf32>
    %150 = arith.mulf %144, %148 : vector<2x64xf32>
    %151 = arith.addf %149, %150 : vector<2x64xf32>
    %152 = math.tanh %151 : vector<2x64xf32>
    %153 = arith.mulf %146, %152 : vector<2x64xf32>
    %154 = vector.extract_strided_slice %153 {offsets = [0, 0], sizes = [2, 32], strides = [1, 1]} : vector<2x64xf32> to vector<2x32xf32>
    %c8_30 = arith.constant 8 : index
    %c0_31 = arith.constant 0 : index
    %155 = vector.load %arg7[%c8_30, %c0_31] : memref<16x64xf32, #tpu.memory_space<vmem>>, vector<2x32xf32>
    tpu.vector_store %arg7[%c8_30, %c0_31], %154 {strides = array<i32>} : memref<16x64xf32, #tpu.memory_space<vmem>>, vector<2x32xf32>,
    %156 = vector.extract_strided_slice %153 {offsets = [0, 32], sizes = [2, 32], strides = [1, 1]} : vector<2x64xf32> to vector<2x32xf32>
    %c6_32 = arith.constant 6 : index
    %c32_33 = arith.constant 32 : index
    %157 = vector.load %arg7[%c6_32, %c32_33] : memref<16x64xf32, #tpu.memory_space<vmem>>, vector<2x32xf32>
    tpu.vector_store %arg7[%c6_32, %c32_33], %156 {strides = array<i32>} : memref<16x64xf32, #tpu.memory_space<vmem>>, vector<2x32xf32>,
    %158 = vector.extract_strided_slice %5 {offsets = [10, 0], sizes = [2, 256], strides = [1, 1]} : vector<16x256xf32> to vector<2x256xf32>
    %159 = vector.extract_strided_slice %5 {offsets = [4, 0], sizes = [2, 256], strides = [1, 1]} : vector<16x256xf32> to vector<2x256xf32>
    %160 = arith.select %24, %158, %159 : vector<2x256xi1>, vector<2x256xf32>
    %161 = arith.truncf %153 : vector<2x64xf32> to vector<2x64xbf16>
    %cst_34 = arith.constant dense<0.000000e+00> : vector<2x256xf32>
    %162 = tpu.matmul %161, %25, %cst_34 {dimension_numbers = #tpu.dot_dimension_numbers<[1], [0], [0], [1], [0, 0, 1, 1], [], []>} : vector<2x64xbf16>, vector<64x256xbf16>, vector<2x256xf32> -> vector<2x256xf32>
    %163 = arith.addf %162, %160 : vector<2x256xf32>
    %164 = vector.extract_strided_slice %163 {offsets = [0, 0], sizes = [2, 192], strides = [1, 1]} : vector<2x256xf32> to vector<2x192xf32>
    %165 = arith.negf %164 : vector<2x192xf32>
    %166 = math.exp %165 : vector<2x192xf32>
    %cst_35 = arith.constant 1.000000e+00 : f32
    %167 = vector.broadcast %cst_35 : f32 to vector<2x192xf32>
    %168 = arith.addf %167, %166 : vector<2x192xf32>
    %169 = arith.divf %167, %168 : vector<2x192xf32>
    %170 = vector.extract_strided_slice %169 {offsets = [0, 0], sizes = [2, 64], strides = [1, 1]} : vector<2x192xf32> to vector<2x64xf32>
    %171 = vector.extract_strided_slice %169 {offsets = [0, 64], sizes = [2, 64], strides = [1, 1]} : vector<2x192xf32> to vector<2x64xf32>
    %172 = vector.extract_strided_slice %169 {offsets = [0, 128], sizes = [2, 64], strides = [1, 1]} : vector<2x192xf32> to vector<2x64xf32>
    %173 = vector.extract_strided_slice %163 {offsets = [0, 192], sizes = [2, 64], strides = [1, 1]} : vector<2x256xf32> to vector<2x64xf32>
    %174 = math.tanh %173 : vector<2x64xf32>
    %175 = arith.mulf %171, %151 : vector<2x64xf32>
    %176 = arith.mulf %170, %174 : vector<2x64xf32>
    %177 = arith.addf %175, %176 : vector<2x64xf32>
    %178 = math.tanh %177 : vector<2x64xf32>
    %179 = arith.mulf %172, %178 : vector<2x64xf32>
    %180 = vector.extract_strided_slice %179 {offsets = [0, 0], sizes = [2, 32], strides = [1, 1]} : vector<2x64xf32> to vector<2x32xf32>
    %c10_36 = arith.constant 10 : index
    %c0_37 = arith.constant 0 : index
    %181 = vector.load %arg7[%c10_36, %c0_37] : memref<16x64xf32, #tpu.memory_space<vmem>>, vector<2x32xf32>
    tpu.vector_store %arg7[%c10_36, %c0_37], %180 {strides = array<i32>} : memref<16x64xf32, #tpu.memory_space<vmem>>, vector<2x32xf32>,
    %182 = vector.extract_strided_slice %179 {offsets = [0, 32], sizes = [2, 32], strides = [1, 1]} : vector<2x64xf32> to vector<2x32xf32>
    %c4_38 = arith.constant 4 : index
    %c32_39 = arith.constant 32 : index
    %183 = vector.load %arg7[%c4_38, %c32_39] : memref<16x64xf32, #tpu.memory_space<vmem>>, vector<2x32xf32>
    tpu.vector_store %arg7[%c4_38, %c32_39], %182 {strides = array<i32>} : memref<16x64xf32, #tpu.memory_space<vmem>>, vector<2x32xf32>,
    %184 = vector.extract_strided_slice %5 {offsets = [12, 0], sizes = [2, 256], strides = [1, 1]} : vector<16x256xf32> to vector<2x256xf32>
    %185 = vector.extract_strided_slice %5 {offsets = [2, 0], sizes = [2, 256], strides = [1, 1]} : vector<16x256xf32> to vector<2x256xf32>
    %186 = arith.select %24, %184, %185 : vector<2x256xi1>, vector<2x256xf32>
    %187 = arith.truncf %179 : vector<2x64xf32> to vector<2x64xbf16>
    %cst_40 = arith.constant dense<0.000000e+00> : vector<2x256xf32>
    %188 = tpu.matmul %187, %25, %cst_40 {dimension_numbers = #tpu.dot_dimension_numbers<[1], [0], [0], [1], [0, 0, 1, 1], [], []>} : vector<2x64xbf16>, vector<64x256xbf16>, vector<2x256xf32> -> vector<2x256xf32>
    %189 = arith.addf %188, %186 : vector<2x256xf32>
    %190 = vector.extract_strided_slice %189 {offsets = [0, 0], sizes = [2, 192], strides = [1, 1]} : vector<2x256xf32> to vector<2x192xf32>
    %191 = arith.negf %190 : vector<2x192xf32>
    %192 = math.exp %191 : vector<2x192xf32>
    %cst_41 = arith.constant 1.000000e+00 : f32
    %193 = vector.broadcast %cst_41 : f32 to vector<2x192xf32>
    %194 = arith.addf %193, %192 : vector<2x192xf32>
    %195 = arith.divf %193, %194 : vector<2x192xf32>
    %196 = vector.extract_strided_slice %195 {offsets = [0, 0], sizes = [2, 64], strides = [1, 1]} : vector<2x192xf32> to vector<2x64xf32>
    %197 = vector.extract_strided_slice %195 {offsets = [0, 64], sizes = [2, 64], strides = [1, 1]} : vector<2x192xf32> to vector<2x64xf32>
    %198 = vector.extract_strided_slice %195 {offsets = [0, 128], sizes = [2, 64], strides = [1, 1]} : vector<2x192xf32> to vector<2x64xf32>
    %199 = vector.extract_strided_slice %189 {offsets = [0, 192], sizes = [2, 64], strides = [1, 1]} : vector<2x256xf32> to vector<2x64xf32>
    %200 = math.tanh %199 : vector<2x64xf32>
    %201 = arith.mulf %197, %177 : vector<2x64xf32>
    %202 = arith.mulf %196, %200 : vector<2x64xf32>
    %203 = arith.addf %201, %202 : vector<2x64xf32>
    %204 = math.tanh %203 : vector<2x64xf32>
    %205 = arith.mulf %198, %204 : vector<2x64xf32>
    %206 = vector.extract_strided_slice %205 {offsets = [0, 0], sizes = [2, 32], strides = [1, 1]} : vector<2x64xf32> to vector<2x32xf32>
    %c12_42 = arith.constant 12 : index
    %c0_43 = arith.constant 0 : index
    %207 = vector.load %arg7[%c12_42, %c0_43] : memref<16x64xf32, #tpu.memory_space<vmem>>, vector<2x32xf32>
    tpu.vector_store %arg7[%c12_42, %c0_43], %206 {strides = array<i32>} : memref<16x64xf32, #tpu.memory_space<vmem>>, vector<2x32xf32>,
    %208 = vector.extract_strided_slice %205 {offsets = [0, 32], sizes = [2, 32], strides = [1, 1]} : vector<2x64xf32> to vector<2x32xf32>
    %c2_44 = arith.constant 2 : index
    %c32_45 = arith.constant 32 : index
    %209 = vector.load %arg7[%c2_44, %c32_45] : memref<16x64xf32, #tpu.memory_space<vmem>>, vector<2x32xf32>
    tpu.vector_store %arg7[%c2_44, %c32_45], %208 {strides = array<i32>} : memref<16x64xf32, #tpu.memory_space<vmem>>, vector<2x32xf32>,
    %210 = vector.extract_strided_slice %5 {offsets = [14, 0], sizes = [2, 256], strides = [1, 1]} : vector<16x256xf32> to vector<2x256xf32>
    %211 = vector.extract_strided_slice %5 {offsets = [0, 0], sizes = [2, 256], strides = [1, 1]} : vector<16x256xf32> to vector<2x256xf32>
    %212 = arith.select %24, %210, %211 : vector<2x256xi1>, vector<2x256xf32>
    %213 = arith.truncf %205 : vector<2x64xf32> to vector<2x64xbf16>
    %cst_46 = arith.constant dense<0.000000e+00> : vector<2x256xf32>
    %214 = tpu.matmul %213, %25, %cst_46 {dimension_numbers = #tpu.dot_dimension_numbers<[1], [0], [0], [1], [0, 0, 1, 1], [], []>} : vector<2x64xbf16>, vector<64x256xbf16>, vector<2x256xf32> -> vector<2x256xf32>
    %215 = arith.addf %214, %212 : vector<2x256xf32>
    %216 = vector.extract_strided_slice %215 {offsets = [0, 0], sizes = [2, 192], strides = [1, 1]} : vector<2x256xf32> to vector<2x192xf32>
    %217 = arith.negf %216 : vector<2x192xf32>
    %218 = math.exp %217 : vector<2x192xf32>
    %cst_47 = arith.constant 1.000000e+00 : f32
    %219 = vector.broadcast %cst_47 : f32 to vector<2x192xf32>
    %220 = arith.addf %219, %218 : vector<2x192xf32>
    %221 = arith.divf %219, %220 : vector<2x192xf32>
    %222 = vector.extract_strided_slice %221 {offsets = [0, 0], sizes = [2, 64], strides = [1, 1]} : vector<2x192xf32> to vector<2x64xf32>
    %223 = vector.extract_strided_slice %221 {offsets = [0, 64], sizes = [2, 64], strides = [1, 1]} : vector<2x192xf32> to vector<2x64xf32>
    %224 = vector.extract_strided_slice %221 {offsets = [0, 128], sizes = [2, 64], strides = [1, 1]} : vector<2x192xf32> to vector<2x64xf32>
    %225 = vector.extract_strided_slice %215 {offsets = [0, 192], sizes = [2, 64], strides = [1, 1]} : vector<2x256xf32> to vector<2x64xf32>
    %226 = math.tanh %225 : vector<2x64xf32>
    %227 = arith.mulf %223, %203 : vector<2x64xf32>
    %228 = arith.mulf %222, %226 : vector<2x64xf32>
    %229 = arith.addf %227, %228 : vector<2x64xf32>
    %230 = math.tanh %229 : vector<2x64xf32>
    %231 = arith.mulf %224, %230 : vector<2x64xf32>
    %232 = vector.extract_strided_slice %231 {offsets = [0, 0], sizes = [2, 32], strides = [1, 1]} : vector<2x64xf32> to vector<2x32xf32>
    %c14_48 = arith.constant 14 : index
    %c0_49 = arith.constant 0 : index
    %233 = vector.load %arg7[%c14_48, %c0_49] : memref<16x64xf32, #tpu.memory_space<vmem>>, vector<2x32xf32>
    tpu.vector_store %arg7[%c14_48, %c0_49], %232 {strides = array<i32>} : memref<16x64xf32, #tpu.memory_space<vmem>>, vector<2x32xf32>,
    %234 = vector.extract_strided_slice %231 {offsets = [0, 32], sizes = [2, 32], strides = [1, 1]} : vector<2x64xf32> to vector<2x32xf32>
    %c0_50 = arith.constant 0 : index
    %c32_51 = arith.constant 32 : index
    %235 = vector.load %arg7[%c0_50, %c32_51] : memref<16x64xf32, #tpu.memory_space<vmem>>, vector<2x32xf32>
    tpu.vector_store %arg7[%c0_50, %c32_51], %234 {strides = array<i32>} : memref<16x64xf32, #tpu.memory_space<vmem>>, vector<2x32xf32>,
    %c0_52 = arith.constant 0 : index
    %c0_53 = arith.constant 0 : index
    %236 = vector.load %arg7[%c0_52, %c0_53] : memref<16x64xf32, #tpu.memory_space<vmem>>, vector<16x64xf32>
    %237 = arith.truncf %236 : vector<16x64xf32> to vector<16x64xbf16>
    %c0_54 = arith.constant 0 : index
    %c0_55 = arith.constant 0 : index
    %238 = vector.load %arg4[%c0_54, %c0_55] : memref<64x8xbf16, #tpu.memory_space<vmem>>, vector<64x8xbf16>
    %cst_56 = arith.constant dense<0.000000e+00> : vector<16x8xf32>
    %239 = tpu.matmul %237, %238, %cst_56 {dimension_numbers = #tpu.dot_dimension_numbers<[1], [0], [0], [1], [0, 0, 1, 1], [], []>} : vector<16x64xbf16>, vector<64x8xbf16>, vector<16x8xf32> -> vector<16x8xf32>
    %c0_57 = arith.constant 0 : index
    %c0_58 = arith.constant 0 : index
    %240 = vector.load %arg5[%c0_57, %c0_58] : memref<1x8xf32, #tpu.memory_space<vmem>>, vector<1x8xf32>
    %241 = vector.broadcast %240 : vector<1x8xf32> to vector<16x8xf32>
    %242 = arith.addf %239, %241 : vector<16x8xf32>
    %cst_59 = arith.constant dense<0xFF800000> : vector<16xf32>
    %243 = vector.multi_reduction <maximumf>, %242, %cst_59 [1] : vector<16x8xf32> to vector<16xf32>
    %244 = vector.shape_cast %243 : vector<16xf32> to vector<16x1xf32>
    %245 = vector.broadcast %244 : vector<16x1xf32> to vector<16x8xf32>
    %246 = arith.subf %242, %245 : vector<16x8xf32>
    %247 = math.exp %246 : vector<16x8xf32>
    %cst_60 = arith.constant dense<0.000000e+00> : vector<16xf32>
    %248 = vector.multi_reduction <add>, %247, %cst_60 [1] : vector<16x8xf32> to vector<16xf32>
    %249 = vector.shape_cast %248 : vector<16xf32> to vector<16x1xf32>
    %250 = vector.broadcast %249 : vector<16x1xf32> to vector<16x8xf32>
    %251 = arith.divf %247, %250 : vector<16x8xf32>
    %c0_61 = arith.constant 0 : index
    %c0_62 = arith.constant 0 : index
    %252 = vector.load %arg6[%c0_61, %c0_62] : memref<16x8xf32, #tpu.memory_space<vmem>>, vector<16x8xf32>
    tpu.vector_store %arg6[%c0_61, %c0_62], %251 {strides = array<i32>} : memref<16x8xf32, #tpu.memory_space<vmem>>, vector<16x8xf32>,
    return
  }
}

</mosaic_0001>

<bundles_post_ra>
// kernel: bilstm_forward.1
= control target key start
LH: loop header
LB: loop body
LE: loop exit
PB: predicated region body
PF: predicated region fallthrough
CT: control target
= control target key end

     0   :  { %v1158_v1 = vmov 0   ;;  %vm55_vm0 = vcmask 130048   ;;  %v30_v12 = vlaneseq  ;;  %vm262_vm3 = vcmask 254976   ;;  %s1442_s1 = inlined_call_operand.vmem [shape: bf16[16,256], index: 1, kind: input, shape index: {}]   ;;  %s1443_s3 = inlined_call_operand.vmem [shape: bf16[64,256], index: 3, kind: input, shape index: {}]   ;;  %s1444_s0 = inlined_call_operand.vmem [shape: bf16[16,16], index: 0, kind: input, shape index: {}]   ;;  %s1445_s2 = inlined_call_operand.vmem [shape: f32[1,256], index: 2, kind: input, shape index: {}]   ;;  %s1446_s4 = inlined_call_operand.vmem [shape: bf16[64,8], index: 4, kind: input, shape index: {}]   ;;  %s1447_s5 = inlined_call_operand.vmem [shape: f32[1,8], index: 5, kind: input, shape index: {}]   ;;  %s1448_s6 = inlined_call_operand.vmem [shape: f32[16,8], index: 6, kind: output, shape index: {}]  }
   0x1   :  { %v1034_v0 = vld [vmem:[%s1442_s1 + $0x4] ss:$8 sps:$4 sm:$0xff]   ;;  %91 = vmatprep.mubr.bf16.mxu0 %v1158_v1  ;;  %223 = vmatprep.mubr.bf16.mxu1 %v1158_v1  ;;  %v1205_v2 = vld [vmem:[%s1443_s3 + $0x34] ss:$8 sps:$4 sm:$0xff]   ;;  %v1038_v3 = vld [vmem:[%s1442_s1] ss:$8 sps:$4 sm:$0xff]  }
   0x2   :  { %73 = vmatprep.subr.bf16.mxu0 %v1034_v0  ;;  %v1213_v4 = vld [vmem:[%s1443_s3 + $0x30] ss:$8 sps:$4 sm:$0xff]   ;;  %199 = vmatprep.subr.bf16.mxu1 %v1205_v2  ;;  %v1040_v5 = vld [vmem:[%s1444_s0] sm:$0xff]   ;;  %v1233_v8 = vld [vmem:[%s1443_s3 + $0x14] ss:$8 sps:$4 sm:$0xff]   ;;  %v31_v13 = vshrl.u32 %v30_v12, 7 }
   0x3   :  { %74 = vmatpush1.bf16.msra.mxu0 %v1038_v3  ;;  %200 = vmatpush1.bf16.msra.mxu1 %v1213_v4  ;;  %v1223_v6 = vld [vmem:[%s1443_s3 + $0x24] ss:$8 sps:$4 sm:$0xff]   ;;  %v1228_v7 = vld [vmem:[%s1443_s3 + $0x20] ss:$8 sps:$4 sm:$0xff]   ;;  %v1241_v9 = vld [vmem:[%s1443_s3 + $0x10] ss:$8 sps:$4 sm:$0xff]  }
   0x4   :  { %290 = vmatprep.subr.bf16.mxu0 %v1205_v2  ;;  %201 = vmatprep.subr.bf16.mxu1 %v1223_v6  ;;  %v1248_v10 = vld [vmem:[%s1443_s3 + $0x4] ss:$8 sps:$4 sm:$0xff]   ;;  %v1256_v11 = vld [vmem:[%s1443_s3] ss:$8 sps:$4 sm:$0xff]   ;;  %v32_v14 = vsub.s32 0, %v31_v13  ;;  %v103_v16 = vand.u32 127, %v30_v12 }
   0x5   :  { %v28_v15 = vld [vmem:[%s1445_s2] sm:$0x3]  ;;  %v36_v17 = vsub.s32 1, %v31_v13  ;;  %s1159_s2 = smov 64   ;;  %vm264_vm4 = vcmask 517376   ;;  %vm187_vm5 = vcmask 523264  }
   0x6   :  { %975 = vmatmul.mubr.msk.bf16.vlgmr.msra.gmra.mxu0 %vm55_vm0, %v1040_v5  ;;  %v33_v18 = vrot.slane %v28_v15, %v32_v14  ;;  %v104_v19 = vadd.s32 128, %v103_v16  ;;  %v109_v22 = vand.u32 63, %v103_v16  ;;  %vm1161_vm6 = vmmov 0  }
   0x7   :  { %202 = vmatpush1.bf16.msra.mxu1 %v1228_v7  ;;  %291 = vmatpush1.bf16.msra.mxu0 %v1213_v4  ;;  %v37_v20 = vrot.slane %v28_v15, %v36_v17  ;;  %vm943_vm7 = vcmask 64512  }
   0x8   :  { %203 = vmatprep.subr.bf16.mxu1 %v1233_v8  ;;  %292 = vmatprep.subr.bf16.mxu0 %v1223_v6  ;;  %v116_v25 = vand.u32 63, %v104_v19  ;;  %vm129_vm1 = vcmp.lt.s32.totalorder %v109_v22, 32 }
   0x9   :  { %314 = vmatprep.mubr.bf16.mxu0 %v1158_v1 }
   0xa   :  { %vm1280_vm2 = vcmp.lt.s32.totalorder %v116_v25, 32 }
   0xb   :  { %204 = vmatpush1.bf16.msra.mxu1 %v1241_v9  ;;  %293 = vmatpush1.bf16.msra.mxu0 %v1228_v7 }
   0xc   :  { %205 = vmatprep.subr.bf16.mxu1 %v1248_v10  ;;  %294 = vmatprep.subr.bf16.mxu0 %v1233_v8 }
   0xf   :  { %206 = vmatpush1.bf16.msra.mxu1 %v1256_v11  ;;  %295 = vmatpush1.bf16.msra.mxu0 %v1241_v9 }
  0x10   :  { %296 = vmatprep.subr.bf16.mxu0 %v1248_v10  ;;  %373 = vmatprep.subr.bf16.mxu1 %v1205_v2 }
  0x12   :  { %224 = vmatmul.mubr.bf16.vlgmr.msra.gmra.mxu1 %v1158_v1 }
  0x13   :  { %297 = vmatpush1.bf16.msra.mxu0 %v1256_v11  ;;  %374 = vmatpush1.bf16.msra.mxu1 %v1213_v4 }
  0x14   :  { %375 = vmatprep.subr.bf16.mxu1 %v1223_v6  ;;  %397 = vmatprep.mubr.bf16.mxu1 %v1158_v1 }
  0x15   :  { %454 = vmatprep.subr.bf16.mxu0 %v1205_v2 }
  0x17   :  { %376 = vmatpush1.bf16.msra.mxu1 %v1228_v7 }
  0x18   :  { %377 = vmatprep.subr.bf16.mxu1 %v1233_v8 }
  0x1b   :  { %378 = vmatpush1.bf16.msra.mxu1 %v1241_v9 }
  0x1c   :  { %379 = vmatprep.subr.bf16.mxu1 %v1248_v10 }
  0x1f   :  { %380 = vmatpush1.bf16.msra.mxu1 %v1256_v11 }
  0x20   :  { %539 = vmatprep.subr.bf16.mxu1 %v1205_v2 }
  0xc6   :  { %v93_v21 = vpop.f32.mrf.mxu0 }
  0xc7   :  { %v94_v23 = vadd.f32 %v93_v21, %v33_v18 }
  0xc8   :  { %v95_v24 = vpop.f32.mrf.mxu0 }
  0xc9   :  { %v96_v26 = vadd.f32 %v95_v24, %v37_v20  ;;  %v521_v27 = vrot.slane %v94_v23, 6  ;;  %v604_v29 = vrot.slane %v94_v23, 2 }
  0xca   :  { %v97_v28 = vpop.f32.mrf.mxu0 }
  0xcb   :  { %v98_v30 = vadd.f32 %v97_v28, %v33_v18  ;;  %v522_v33 = vrot.slane %v96_v26, 6  ;;  %v605_v34 = vrot.slane %v96_v26, 2 }
  0xcc   :  { %v99_v31 = vpop.f32.mrf.mxu0 }
  0xcd   :  { %v100_v35 = vadd.f32 %v99_v31, %v37_v20  ;;  %v141_v36 = vrot.slane %v98_v30, 6  ;;  %v266_v37 = vrot.slane %v98_v30, 2  ;;  %v1284_v38 = vsel %vm129_vm1, %v98_v30, %v521_v27 }
  0xce   :  { %v1286_v39 = vsel %vm129_vm1, %v98_v30, %v604_v29 }
  0xcf   :  { %v1288_v40 = vsel %vm129_vm1, %v94_v23, %v141_v36  ;;  %v1290_v41 = vsel %vm129_vm1, %v94_v23, %v266_v37  ;;  %v267_v42 = vrot.slane %v100_v35, 2  ;;  %v142_v43 = vrot.slane %v100_v35, 6 }
  0xd0   :  { %v1294_v44 = vsel %vm1280_vm2, %v100_v35, %v522_v33  ;;  %v1302_v46 = vsel %vm1280_vm2, %v100_v35, %v605_v34  ;;  %v275_v17 = vrot.slane %v1290_v41, 2 }
  0xd1   :  { %v1298_v45 = vsel %vm1280_vm2, %v96_v26, %v267_v42  ;;  %v1307_v49 = vsel %vm1280_vm2, %v96_v26, %v142_v43 }
  0xd2   :  { %v225_v47 = vpop.f32.mrf.mxu1  ;;  %v276_v20 = vrot.slane %v1298_v45, 2 }
  0xd3   :  { %v226_v48 = vadd.f32 %v225_v47, %v1288_v40 }
  0xd4   :  { %v227_v50 = vpop.f32.mrf.mxu1 }
  0xd5   :  { %v228_v51 = vadd.f32 %v227_v50, %v1307_v49  ;;  %v984_v55 = vmul.f32 -1.442695, %v226_v48 }
  0xd6   :  { %v229_v52 = vpop.f32.mrf.mxu1 }
  0xd7   :  { %1054 = vtanh.f32 %v228_v51  ;;  %v985_v3 = vmul.f32 -1.442695, %v228_v51  ;;  %v358_v51 = vrot.slane %v1288_v40, 4 }
  0xd8   :  { %v230_v53 = vpop.f32.mrf.mxu1  ;;  %1056 = vpow2.f32 %v984_v55 }
  0xe4   :  { %v1055_v54 = vpop.eup %1054 }
  0xe5   :  { %247 = vrot.lane.b32.xlu0 %v1055_v54, %s1159_s2  ;;  %v1057_v56 = vpop.eup %1056  ;;  %v359_v54 = vrot.slane %v1307_v49, 4 }
  0xe6   :  { %v238_v57 = vadd.f32 1.0, %v1057_v56 }
  0xe8   :  { %1058 = vrcp.f32 %v238_v57 }
  0xf5   :  { %v1059_v58 = vpop.eup %1058 }
  0xf6   :  { %v245_v61 = vmul.f32 0.0, %v1059_v58 }
 0x157   :  { %v248_v59 = vpop.permute.xlu0 %247 }
 0x158   :  { %v250_v60 = vmul.f32 %v1059_v58, %v248_v59 }
 0x15a   :  { %252 = vrot.lane.b32.xlu0 %v250_v60, %s1159_s2 }
 0x1cc   :  { %v253_v62 = vpop.permute.xlu0 %252 }
 0x1cd   :  { %v255_v63 = vadd.f32 %v253_v62, %v245_v61 }
 0x1cf   :  { %1060 = vtanh.f32 %v255_v63 }
 0x1d0   :  { %1062 = vpow2.f32 %v985_v3 }
 0x1dc   :  { %v1061_v0 = vpop.eup %1060 }
 0x1dd   :  { %258 = vrot.lane.b32.xlu1 %v1061_v0, %s1159_s2  ;;  %v1063_v5 = vpop.eup %1062 }
 0x1de   :  { %v239_v12 = vadd.f32 1.0, %v1063_v5 }
 0x1e0   :  { %1064 = vrcp.f32 %v239_v12 }
 0x1ed   :  { %v1065_v13 = vpop.eup %1064 }
 0x24f   :  { %v259_v14 = vpop.permute.xlu1 %258 }
 0x250   :  { %v261_v15 = vmul.f32 %v1065_v13, %v259_v14 }
 0x252   :  { %263 = vst.msk [vmem:[#allocation2] sm:$0x3] %vm262_vm3, %v261_v15  ;;  %v272_v16 = vpack.c.bf16 %v261_v15, %v261_v15 }
 0x253   :  { %265 = vst.msk [vmem:[#allocation2 + $0xe] sm:$0x3] %vm264_vm4, %v261_v15 }
 0x254   :  { %986 = vmatmul.mubr.msk.bf16.vlgmr.msra.gmra.mxu0 %vm187_vm5, %v272_v16 }
 0x255   :  { %455 = vmatpush1.bf16.msra.mxu0 %v1213_v4  ;;  %478 = vmatprep.mubr.bf16.mxu0 %v1158_v1 }
 0x256   :  { %456 = vmatprep.subr.bf16.mxu0 %v1223_v6 }
 0x259   :  { %457 = vmatpush1.bf16.msra.mxu0 %v1228_v7 }
 0x25a   :  { %458 = vmatprep.subr.bf16.mxu0 %v1233_v8 }
 0x25d   :  { %459 = vmatpush1.bf16.msra.mxu0 %v1241_v9 }
 0x25e   :  { %460 = vmatprep.subr.bf16.mxu0 %v1248_v10 }
 0x261   :  { %461 = vmatpush1.bf16.msra.mxu0 %v1256_v11 }
 0x262   :  { %628 = vmatprep.subr.bf16.mxu0 %v1205_v2 }
 0x314   :  { %v316_v18 = vpop.f32.mrf.mxu0 }
 0x315   :  { %v317_v19 = vadd.f32 %v316_v18, %v275_v17 }
 0x316   :  { %v318_v21 = vpop.f32.mrf.mxu0 }
 0x317   :  { %v319_v22 = vadd.f32 %v318_v21, %v276_v20  ;;  %v987_v26 = vmul.f32 -1.442695, %v317_v19  ;;  %v439_v20 = vrot.slane %v1290_v41, 6 }
 0x318   :  { %v320_v23 = vpop.f32.mrf.mxu0 }
 0x319   :  { %1066 = vtanh.f32 %v319_v22  ;;  %v988_v36 = vmul.f32 -1.442695, %v319_v22  ;;  %v440_v23 = vrot.slane %v1298_v45, 6 }
 0x31a   :  { %v321_v24 = vpop.f32.mrf.mxu0  ;;  %1068 = vpow2.f32 %v987_v26 }
 0x326   :  { %v1067_v25 = vpop.eup %1066 }
 0x327   :  { %338 = vrot.lane.b32.xlu1 %v1067_v25, %s1159_s2  ;;  %v1069_v27 = vpop.eup %1068 }
 0x328   :  { %v329_v28 = vadd.f32 1.0, %v1069_v27 }
 0x32a   :  { %1070 = vrcp.f32 %v329_v28 }
 0x337   :  { %v1071_v29 = vpop.eup %1070 }
 0x338   :  { %v336_v32 = vmul.f32 %v1071_v29, %v255_v63 }
 0x399   :  { %v339_v30 = vpop.permute.xlu1 %338 }
 0x39a   :  { %v341_v31 = vmul.f32 %v1071_v29, %v339_v30 }
 0x39c   :  { %343 = vrot.lane.b32.xlu0 %v341_v31, %s1159_s2 }
 0x40e   :  { %v344_v33 = vpop.permute.xlu0 %343 }
 0x40f   :  { %v346_v34 = vadd.f32 %v344_v33, %v336_v32 }
 0x411   :  { %1072 = vtanh.f32 %v346_v34 }
 0x412   :  { %1074 = vpow2.f32 %v988_v36 }
 0x41e   :  { %v1073_v35 = vpop.eup %1072 }
 0x41f   :  { %349 = vrot.lane.b32.xlu1 %v1073_v35, %s1159_s2  ;;  %v1075_v37 = vpop.eup %1074 }
 0x420   :  { %v330_v42 = vadd.f32 1.0, %v1075_v37 }
 0x422   :  { %1076 = vrcp.f32 %v330_v42 }
 0x42f   :  { %v1077_v43 = vpop.eup %1076 }
 0x491   :  { %v350_v47 = vpop.permute.xlu1 %349 }
 0x492   :  { %v352_v48 = vmul.f32 %v1077_v43, %v350_v47 }
 0x494   :  { %353 = vst.msk [vmem:[#allocation2 + $0x2] sm:$0x3] %vm262_vm3, %v352_v48  ;;  %v355_v50 = vpack.c.bf16 %v352_v48, %v352_v48 }
 0x495   :  { %354 = vst.msk [vmem:[#allocation2 + $0xc] sm:$0x3] %vm264_vm4, %v352_v48 }
 0x496   :  { %989 = vmatmul.mubr.msk.bf16.vlgmr.msra.gmra.mxu1 %vm187_vm5, %v355_v50 }
 0x497   :  { %540 = vmatpush1.bf16.msra.mxu1 %v1213_v4  ;;  %563 = vmatprep.mubr.bf16.mxu1 %v1158_v1 }
 0x498   :  { %541 = vmatprep.subr.bf16.mxu1 %v1223_v6 }
 0x49b   :  { %542 = vmatpush1.bf16.msra.mxu1 %v1228_v7 }
 0x49c   :  { %543 = vmatprep.subr.bf16.mxu1 %v1233_v8 }
 0x49f   :  { %544 = vmatpush1.bf16.msra.mxu1 %v1241_v9 }
 0x4a0   :  { %545 = vmatprep.subr.bf16.mxu1 %v1248_v10 }
 0x4a3   :  { %546 = vmatpush1.bf16.msra.mxu1 %v1256_v11 }
 0x4a4   :  { %711 = vmatprep.subr.bf16.mxu1 %v1205_v2 }
 0x556   :  { %v399_v52 = vpop.f32.mrf.mxu1 }
 0x557   :  { %v400_v53 = vadd.f32 %v399_v52, %v358_v51 }
 0x558   :  { %v401_v55 = vpop.f32.mrf.mxu1 }
 0x559   :  { %v402_v56 = vadd.f32 %v401_v55, %v359_v54  ;;  %v990_v60 = vmul.f32 -1.442695, %v400_v53 }
 0x55a   :  { %v403_v57 = vpop.f32.mrf.mxu1 }
 0x55b   :  { %1078 = vtanh.f32 %v402_v56  ;;  %v991_v13 = vmul.f32 -1.442695, %v402_v56 }
 0x55c   :  { %v404_v58 = vpop.f32.mrf.mxu1  ;;  %1080 = vpow2.f32 %v990_v60 }
 0x568   :  { %v1079_v59 = vpop.eup %1078 }
 0x569   :  { %421 = vrot.lane.b32.xlu0 %v1079_v59, %s1159_s2  ;;  %v1081_v61 = vpop.eup %1080 }
 0x56a   :  { %v412_v62 = vadd.f32 1.0, %v1081_v61 }
 0x56c   :  { %1082 = vrcp.f32 %v412_v62 }
 0x579   :  { %v1083_v63 = vpop.eup %1082 }
 0x57a   :  { %v419_v3 = vmul.f32 %v1083_v63, %v346_v34 }
 0x5db   :  { %v422_v0 = vpop.permute.xlu0 %421 }
 0x5dc   :  { %v424_v40 = vmul.f32 %v1083_v63, %v422_v0 }
 0x5de   :  { %426 = vrot.lane.b32.xlu1 %v424_v40, %s1159_s2 }
 0x650   :  { %v427_v49 = vpop.permute.xlu1 %426 }
 0x651   :  { %v429_v5 = vadd.f32 %v427_v49, %v419_v3 }
 0x653   :  { %1084 = vtanh.f32 %v429_v5 }
 0x654   :  { %1086 = vpow2.f32 %v991_v13 }
 0x660   :  { %v1085_v12 = vpop.eup %1084 }
 0x661   :  { %432 = vrot.lane.b32.xlu0 %v1085_v12, %s1159_s2  ;;  %v1087_v14 = vpop.eup %1086 }
 0x662   :  { %v413_v15 = vadd.f32 1.0, %v1087_v14 }
 0x664   :  { %1088 = vrcp.f32 %v413_v15 }
 0x671   :  { %v1089_v16 = vpop.eup %1088 }
 0x6d3   :  { %v433_v17 = vpop.permute.xlu0 %432 }
 0x6d4   :  { %v435_v18 = vmul.f32 %v1089_v16, %v433_v17 }
 0x6d6   :  { %436 = vst.msk [vmem:[#allocation2 + $0x4] sm:$0x3] %vm262_vm3, %v435_v18  ;;  %v438_v19 = vpack.c.bf16 %v435_v18, %v435_v18 }
 0x6d7   :  { %437 = vst.msk [vmem:[#allocation2 + $0xa] sm:$0x3] %vm264_vm4, %v435_v18  ;;  %v613_v18 = vrot.slane %v1286_v39, 2 }
 0x6d8   :  { %992 = vmatmul.mubr.msk.bf16.vlgmr.msra.gmra.mxu0 %vm187_vm5, %v438_v19 }
 0x6d9   :  { %629 = vmatpush1.bf16.msra.mxu0 %v1213_v4  ;;  %652 = vmatprep.mubr.bf16.mxu0 %v1158_v1 }
 0x6da   :  { %630 = vmatprep.subr.bf16.mxu0 %v1223_v6 }
 0x6dd   :  { %631 = vmatpush1.bf16.msra.mxu0 %v1228_v7 }
 0x6de   :  { %632 = vmatprep.subr.bf16.mxu0 %v1233_v8 }
 0x6e1   :  { %633 = vmatpush1.bf16.msra.mxu0 %v1241_v9 }
 0x6e2   :  { %634 = vmatprep.subr.bf16.mxu0 %v1248_v10 }
 0x6e5   :  { %635 = vmatpush1.bf16.msra.mxu0 %v1256_v11 }
 0x6e6   :  { %792 = vmatprep.subr.bf16.mxu0 %v1205_v2 }
 0x798   :  { %v480_v21 = vpop.f32.mrf.mxu0 }
 0x799   :  { %v481_v22 = vadd.f32 %v480_v21, %v439_v20 }
 0x79a   :  { %v482_v24 = vpop.f32.mrf.mxu0 }
 0x79b   :  { %v483_v25 = vadd.f32 %v482_v24, %v440_v23  ;;  %v993_v29 = vmul.f32 -1.442695, %v481_v22 }
 0x79c   :  { %v484_v26 = vpop.f32.mrf.mxu0 }
 0x79d   :  { %1090 = vtanh.f32 %v483_v25  ;;  %v994_v36 = vmul.f32 -1.442695, %v483_v25 }
 0x79e   :  { %v485_v27 = vpop.f32.mrf.mxu0  ;;  %1092 = vpow2.f32 %v993_v29 }
 0x7aa   :  { %v1091_v28 = vpop.eup %1090 }
 0x7ab   :  { %502 = vrot.lane.b32.xlu1 %v1091_v28, %s1159_s2  ;;  %v1093_v30 = vpop.eup %1092 }
 0x7ac   :  { %v493_v31 = vadd.f32 1.0, %v1093_v30 }
 0x7ae   :  { %1094 = vrcp.f32 %v493_v31 }
 0x7bb   :  { %v1095_v2 = vpop.eup %1094 }
 0x7bc   :  { %v500_v33 = vmul.f32 %v1095_v2, %v429_v5 }
 0x81d   :  { %v503_v32 = vpop.permute.xlu1 %502 }
 0x81e   :  { %v505_v41 = vmul.f32 %v1095_v2, %v503_v32 }
 0x820   :  { %507 = vrot.lane.b32.xlu0 %v505_v41, %s1159_s2 }
 0x892   :  { %v508_v45 = vpop.permute.xlu0 %507 }
 0x893   :  { %v510_v34 = vadd.f32 %v508_v45, %v500_v33 }
 0x895   :  { %1096 = vtanh.f32 %v510_v34 }
 0x896   :  { %1098 = vpow2.f32 %v994_v36 }
 0x8a2   :  { %v1097_v35 = vpop.eup %1096 }
 0x8a3   :  { %513 = vrot.lane.b32.xlu1 %v1097_v35, %s1159_s2  ;;  %v1099_v37 = vpop.eup %1098 }
 0x8a4   :  { %v494_v42 = vadd.f32 1.0, %v1099_v37 }
 0x8a6   :  { %1100 = vrcp.f32 %v494_v42 }
 0x8b3   :  { %v1101_v43 = vpop.eup %1100 }
 0x915   :  { %v514_v47 = vpop.permute.xlu1 %513 }
 0x916   :  { %v516_v48 = vmul.f32 %v1101_v43, %v514_v47  ;;  %v696_v47 = vrot.slane %v1284_v38, 4 }
 0x918   :  { %517 = vst.msk [vmem:[#allocation2 + $0x6] sm:$0x3] %vm262_vm3, %v516_v48  ;;  %v527_v50 = vpack.c.bf16 %v516_v48, %v516_v48 }
 0x919   :  { %518 = vst.msk [vmem:[#allocation2 + $0x8] sm:$0x3] %vm264_vm4, %v516_v48 }
 0x91a   :  { %995 = vmatmul.mubr.msk.bf16.vlgmr.msra.gmra.mxu1 %vm187_vm5, %v527_v50 }
 0x91b   :  { %712 = vmatpush1.bf16.msra.mxu1 %v1213_v4  ;;  %735 = vmatprep.mubr.bf16.mxu1 %v1158_v1 }
 0x91c   :  { %713 = vmatprep.subr.bf16.mxu1 %v1223_v6 }
 0x91f   :  { %714 = vmatpush1.bf16.msra.mxu1 %v1228_v7 }
 0x920   :  { %715 = vmatprep.subr.bf16.mxu1 %v1233_v8 }
 0x923   :  { %716 = vmatpush1.bf16.msra.mxu1 %v1241_v9 }
 0x924   :  { %717 = vmatprep.subr.bf16.mxu1 %v1248_v10 }
 0x927   :  { %718 = vmatpush1.bf16.msra.mxu1 %v1256_v11 }
 0x9da   :  { %v565_v51 = vpop.f32.mrf.mxu1 }
 0x9db   :  { %v566_v57 = vadd.f32 %v565_v51, %v1284_v38 }
 0x9dc   :  { %v567_v52 = vpop.f32.mrf.mxu1 }
 0x9dd   :  { %v568_v53 = vadd.f32 %v567_v52, %v1294_v44  ;;  %v996_v58 = vmul.f32 -1.442695, %v566_v57 }
 0x9de   :  { %v569_v54 = vpop.f32.mrf.mxu1 }
 0x9df   :  { %1102 = vtanh.f32 %v568_v53  ;;  %v997_v5 = vmul.f32 -1.442695, %v568_v53 }
 0x9e0   :  { %v570_v55 = vpop.f32.mrf.mxu1  ;;  %1104 = vpow2.f32 %v996_v58 }
 0x9ec   :  { %v1103_v56 = vpop.eup %1102 }
 0x9ed   :  { %587 = vrot.lane.b32.xlu0 %v1103_v56, %s1159_s2  ;;  %v1105_v59 = vpop.eup %1104 }
 0x9ee   :  { %v578_v60 = vadd.f32 1.0, %v1105_v59 }
 0x9f0   :  { %1106 = vrcp.f32 %v578_v60 }
 0x9fd   :  { %v1107_v61 = vpop.eup %1106 }
 0x9fe   :  { %v585_v0 = vmul.f32 %v1107_v61, %v510_v34  ;;  %v697_v34 = vrot.slane %v1294_v44, 4 }
 0xa5f   :  { %v588_v62 = vpop.permute.xlu0 %587 }
 0xa60   :  { %v590_v63 = vmul.f32 %v1107_v61, %v588_v62 }
 0xa62   :  { %592 = vrot.lane.b32.xlu1 %v590_v63, %s1159_s2 }
 0xad4   :  { %v593_v40 = vpop.permute.xlu1 %592 }
 0xad5   :  { %v595_v3 = vadd.f32 %v593_v40, %v585_v0  ;;  %v777_v40 = vrot.slane %v1286_v39, 6 }
 0xad7   :  { %1108 = vtanh.f32 %v595_v3 }
 0xad8   :  { %1110 = vpow2.f32 %v997_v5  ;;  %v778_v5 = vrot.slane %v1302_v46, 6 }
 0xae4   :  { %v1109_v49 = vpop.eup %1108 }
 0xae5   :  { %598 = vrot.lane.b32.xlu0 %v1109_v49, %s1159_s2  ;;  %v1111_v12 = vpop.eup %1110 }
 0xae6   :  { %v579_v13 = vadd.f32 1.0, %v1111_v12 }
 0xae8   :  { %1112 = vrcp.f32 %v579_v13 }
 0xaf5   :  { %v1113_v14 = vpop.eup %1112 }
 0xb57   :  { %v599_v15 = vpop.permute.xlu0 %598 }
 0xb58   :  { %v601_v16 = vmul.f32 %v1113_v14, %v599_v15 }
 0xb5a   :  { %602 = vst.msk [vmem:[#allocation2 + $0x8] sm:$0x3] %vm262_vm3, %v601_v16  ;;  %v610_v17 = vpack.c.bf16 %v601_v16, %v601_v16 }
 0xb5b   :  { %603 = vst.msk [vmem:[#allocation2 + $0x6] sm:$0x3] %vm264_vm4, %v601_v16 }
 0xb5c   :  { %998 = vmatmul.mubr.msk.bf16.vlgmr.msra.gmra.mxu0 %vm187_vm5, %v610_v17 }
 0xb5d   :  { %793 = vmatpush1.bf16.msra.mxu0 %v1213_v4  ;;  %816 = vmatprep.mubr.bf16.mxu0 %v1158_v1  ;;  %v614_v4 = vrot.slane %v1302_v46, 2  ;;  %v1050_v46 = vld [vmem:[%s1446_s4 + $0x18] sm:$0xff]  }
 0xb5e   :  { %794 = vmatprep.subr.bf16.mxu0 %v1223_v6 }
 0xb61   :  { %795 = vmatpush1.bf16.msra.mxu0 %v1228_v7 }
 0xb62   :  { %796 = vmatprep.subr.bf16.mxu0 %v1233_v8 }
 0xb65   :  { %797 = vmatpush1.bf16.msra.mxu0 %v1241_v9 }
 0xb66   :  { %798 = vmatprep.subr.bf16.mxu0 %v1248_v10 }
 0xb69   :  { %799 = vmatpush1.bf16.msra.mxu0 %v1256_v11 }
 0xc1c   :  { %v654_v19 = vpop.f32.mrf.mxu0 }
 0xc1d   :  { %v655_v20 = vadd.f32 %v654_v19, %v613_v18 }
 0xc1e   :  { %v656_v21 = vpop.f32.mrf.mxu0 }
 0xc1f   :  { %v657_v1 = vadd.f32 %v656_v21, %v614_v4  ;;  %v999_v8 = vmul.f32 -1.442695, %v655_v20  ;;  %v1160_v21 = vmov 0.0  }
 0xc20   :  { %v658_v22 = vpop.f32.mrf.mxu0  ;;  %1018 = vmatprep.subr.bf16.mxu1 %v1160_v21 }
 0xc21   :  { %1114 = vtanh.f32 %v657_v1  ;;  %v1000_v29 = vmul.f32 -1.442695, %v657_v1 }
 0xc22   :  { %v659_v6 = vpop.f32.mrf.mxu0  ;;  %1116 = vpow2.f32 %v999_v8  ;;  %v1052_v8 = vld [vmem:[%s1446_s4 + $0x8] sm:$0xff]  }
 0xc2e   :  { %v1115_v7 = vpop.eup %1114 }
 0xc2f   :  { %676 = vrot.lane.b32.xlu1 %v1115_v7, %s1159_s2  ;;  %v1117_v9 = vpop.eup %1116  ;;  %v1051_v7 = vld [vmem:[%s1446_s4 + $0x10] sm:$0xff]  }
 0xc30   :  { %v667_v10 = vadd.f32 1.0, %v1117_v9  ;;  %v1053_v9 = vld [vmem:[%s1446_s4] sm:$0xff]  }
 0xc32   :  { %1118 = vrcp.f32 %v667_v10 }
 0xc3f   :  { %v1119_v11 = vpop.eup %1118 }
 0xc40   :  { %v674_v25 = vmul.f32 %v1119_v11, %v595_v3 }
 0xca1   :  { %v677_v23 = vpop.permute.xlu1 %676 }
 0xca2   :  { %v679_v24 = vmul.f32 %v1119_v11, %v677_v23 }
 0xca4   :  { %681 = vrot.lane.b32.xlu0 %v679_v24, %s1159_s2 }
 0xd16   :  { %v682_v26 = vpop.permute.xlu0 %681 }
 0xd17   :  { %v684_v27 = vadd.f32 %v682_v26, %v674_v25 }
 0xd19   :  { %1120 = vtanh.f32 %v684_v27 }
 0xd1a   :  { %1122 = vpow2.f32 %v1000_v29 }
 0xd26   :  { %v1121_v28 = vpop.eup %1120 }
 0xd27   :  { %687 = vrot.lane.b32.xlu1 %v1121_v28, %s1159_s2  ;;  %v1123_v30 = vpop.eup %1122 }
 0xd28   :  { %v668_v31 = vadd.f32 1.0, %v1123_v30 }
 0xd2a   :  { %1124 = vrcp.f32 %v668_v31  ;;  %v1007_v31 = vld [vmem:[%s1447_s5] ss:$0 sm:$0xff] }
 0xd37   :  { %v1125_v2 = vpop.eup %1124 }
 0xd99   :  { %v688_v32 = vpop.permute.xlu1 %687 }
 0xd9a   :  { %v690_v41 = vmul.f32 %v1125_v2, %v688_v32 }
 0xd9c   :  { %691 = vst.msk [vmem:[#allocation2 + $0xa] sm:$0x3] %vm262_vm3, %v690_v41  ;;  %v693_v33 = vpack.c.bf16 %v690_v41, %v690_v41 }
 0xd9d   :  { %692 = vst.msk [vmem:[#allocation2 + $0x4] sm:$0x3] %vm264_vm4, %v690_v41 }
 0xd9e   :  { %1001 = vmatmul.mubr.msk.bf16.vlgmr.msra.gmra.mxu1 %vm187_vm5, %v693_v33 }
 0xd9f   :  { %1019 = vmatpush3.bf16.msra.mxu1 %v1050_v46  ;;  %1026 = vmatprep.mubr.msk.bf16.mxu1 %vm1161_vm6, %v1160_v21 }
 0xda0   :  { %1020 = vmatprep.subr.bf16.mxu1 %v1160_v21 }
 0xda3   :  { %1021 = vmatpush3.bf16.msra.mxu1 %v1051_v7 }
 0xda4   :  { %1022 = vmatprep.subr.bf16.mxu1 %v1160_v21 }
 0xda7   :  { %1023 = vmatpush3.bf16.msra.mxu1 %v1052_v8 }
 0xda8   :  { %1024 = vmatprep.subr.bf16.mxu1 %v1160_v21 }
 0xdab   :  { %1025 = vmatpush3.bf16.msra.mxu1 %v1053_v9 }
 0xe5e   :  { %v737_v45 = vpop.f32.mrf.mxu1 }
 0xe5f   :  { %v738_v48 = vadd.f32 %v737_v45, %v696_v47 }
 0xe60   :  { %v739_v35 = vpop.f32.mrf.mxu1 }
 0xe61   :  { %v740_v36 = vadd.f32 %v739_v35, %v697_v34  ;;  %v1002_v50 = vmul.f32 -1.442695, %v738_v48 }
 0xe62   :  { %v741_v37 = vpop.f32.mrf.mxu1 }
 0xe63   :  { %1126 = vtanh.f32 %v740_v36  ;;  %v1003_v59 = vmul.f32 -1.442695, %v740_v36 }
 0xe64   :  { %v742_v42 = vpop.f32.mrf.mxu1  ;;  %1128 = vpow2.f32 %v1002_v50 }
 0xe70   :  { %v1127_v43 = vpop.eup %1126 }
 0xe71   :  { %759 = vrot.lane.b32.xlu0 %v1127_v43, %s1159_s2  ;;  %v1129_v51 = vpop.eup %1128 }
 0xe72   :  { %v750_v52 = vadd.f32 1.0, %v1129_v51 }
 0xe74   :  { %1130 = vrcp.f32 %v750_v52 }
 0xe81   :  { %v1131_v53 = vpop.eup %1130 }
 0xe82   :  { %v757_v44 = vmul.f32 %v1131_v53, %v684_v27 }
 0xee3   :  { %v760_v54 = vpop.permute.xlu0 %759 }
 0xee4   :  { %v762_v55 = vmul.f32 %v1131_v53, %v760_v54 }
 0xee6   :  { %764 = vrot.lane.b32.xlu1 %v762_v55, %s1159_s2 }
 0xf58   :  { %v765_v56 = vpop.permute.xlu1 %764 }
 0xf59   :  { %v767_v57 = vadd.f32 %v765_v56, %v757_v44 }
 0xf5b   :  { %1132 = vtanh.f32 %v767_v57 }
 0xf5c   :  { %1134 = vpow2.f32 %v1003_v59 }
 0xf68   :  { %v1133_v58 = vpop.eup %1132 }
 0xf69   :  { %770 = vrot.lane.b32.xlu0 %v1133_v58, %s1159_s2  ;;  %v1135_v38 = vpop.eup %1134 }
 0xf6a   :  { %v751_v60 = vadd.f32 1.0, %v1135_v38 }
 0xf6c   :  { %1136 = vrcp.f32 %v751_v60 }
 0xf79   :  { %v1137_v61 = vpop.eup %1136 }
 0xfdb   :  { %v771_v62 = vpop.permute.xlu0 %770 }
 0xfdc   :  { %v773_v63 = vmul.f32 %v1137_v61, %v771_v62 }
 0xfde   :  { %774 = vst.msk [vmem:[#allocation2 + $0xc] sm:$0x3] %vm262_vm3, %v773_v63  ;;  %v776_v0 = vpack.c.bf16 %v773_v63, %v773_v63 }
 0xfdf   :  { %775 = vst.msk [vmem:[#allocation2 + $0x2] sm:$0x3] %vm264_vm4, %v773_v63 }
 0xfe0   :  { %1004 = vmatmul.mubr.msk.bf16.vlgmr.msra.gmra.mxu0 %vm187_vm5, %v776_v0 }
0x10a0   :  { %v818_v3 = vpop.f32.mrf.mxu0 }
0x10a1   :  { %v819_v49 = vadd.f32 %v818_v3, %v777_v40 }
0x10a2   :  { %v820_v12 = vpop.f32.mrf.mxu0 }
0x10a3   :  { %v821_v13 = vadd.f32 %v820_v12, %v778_v5  ;;  %v1005_v17 = vmul.f32 -1.442695, %v819_v49 }
0x10a4   :  { %v822_v14 = vpop.f32.mrf.mxu0 }
0x10a5   :  { %1138 = vtanh.f32 %v821_v13  ;;  %v1006_v11 = vmul.f32 -1.442695, %v821_v13 }
0x10a6   :  { %v823_v15 = vpop.f32.mrf.mxu0  ;;  %1140 = vpow2.f32 %v1005_v17 }
0x10b2   :  { %v1139_v16 = vpop.eup %1138 }
0x10b3   :  { %840 = vrot.lane.b32.xlu1 %v1139_v16, %s1159_s2  ;;  %v1141_v18 = vpop.eup %1140 }
0x10b4   :  { %v831_v19 = vadd.f32 1.0, %v1141_v18 }
0x10b6   :  { %1142 = vrcp.f32 %v831_v19 }
0x10c3   :  { %v1143_v20 = vpop.eup %1142 }
0x10c4   :  { %v838_v1 = vmul.f32 %v1143_v20, %v767_v57 }
0x1125   :  { %v841_v4 = vpop.permute.xlu1 %840 }
0x1126   :  { %v843_v39 = vmul.f32 %v1143_v20, %v841_v4 }
0x1128   :  { %845 = vrot.lane.b32.xlu0 %v843_v39, %s1159_s2 }
0x119a   :  { %v846_v22 = vpop.permute.xlu0 %845 }
0x119b   :  { %v848_v6 = vadd.f32 %v846_v22, %v838_v1 }
0x119d   :  { %1144 = vtanh.f32 %v848_v6 }
0x119e   :  { %1146 = vpow2.f32 %v1006_v11 }
0x11aa   :  { %v1145_v10 = vpop.eup %1144 }
0x11ab   :  { %851 = vrot.lane.b32.xlu1 %v1145_v10, %s1159_s2  ;;  %v1147_v23 = vpop.eup %1146 }
0x11ac   :  { %v832_v24 = vadd.f32 1.0, %v1147_v23 }
0x11ae   :  { %1148 = vrcp.f32 %v832_v24 }
0x11bb   :  { %v1149_v25 = vpop.eup %1148 }
0x121d   :  { %v852_v26 = vpop.permute.xlu1 %851 }
0x121e   :  { %v854_v27 = vmul.f32 %v1149_v25, %v852_v26 }
0x1220   :  { %855 = vst.msk [vmem:[#allocation2 + $0xe] sm:$0x3] %vm262_vm3, %v854_v27 }
0x1221   :  { %856 = vst.msk [vmem:[#allocation2] sm:$0x3] %vm264_vm4, %v854_v27 }
0x1227   :  { %v858_v29 = vld [vmem:[#allocation2 + $0x8] sm:$0xff] }
0x1228   :  { %v857_v28 = vld [vmem:[#allocation2] sm:$0xff] }
0x1229   :  { %v859_v30 = vpack.c.bf16 %v858_v29, %v857_v28 }
0x122b   :  { %1027 = vmatmul.mubr.msk.bf16.vlgmr.msra.gmra.mxu1 %vm187_vm5, %v859_v30 }
0x12eb   :  { %v936_v2 = vpop.f32.mrf.mxu1 }
0x12ec   :  { %v937_v32 = vadd.f32 %v1007_v31, %v936_v2 }
0x12ed   :  { %v1028_v41 = vpop.f32.mrf.mxu1 }
0x12ee   :  { %v944_v33 = vsel %vm943_vm7, %v937_v32, -inf }
0x12ef   :  { %945 = vmax.xlane.f32.xlu0 %v944_v33  ;;  %v939_v45 = vpop.f32.mrf.mxu1 }
0x12f0   :  { %v940_v34 = vadd.f32 %v1007_v31, %v939_v45 }
0x12f1   :  { %v1029_v35 = vpop.f32.mrf.mxu1 }
0x12f2   :  { %v947_v36 = vsel %vm943_vm7, %v940_v34, -inf }
0x12f3   :  { %948 = vmax.xlane.f32.xlu1 %v947_v36 }
0x1378   :  { %v946_v37 = vpop.xlane.xlu0 %945 }
0x1379   :  { %v950_v42 = vsub.f32 %v937_v32, %v946_v37 }
0x137b   :  { %v952_v43 = vmul.f32 1.442695, %v950_v42 }
0x137c   :  { %v949_v47 = vpop.xlane.xlu1 %948 }
0x137d   :  { %1150 = vpow2.f32 %v952_v43  ;;  %v951_v48 = vsub.f32 %v940_v34, %v949_v47 }
0x137f   :  { %v954_v50 = vmul.f32 1.442695, %v951_v48 }
0x1381   :  { %1152 = vpow2.f32 %v954_v50 }
0x138a   :  { %v1151_v51 = vpop.eup %1150 }
0x138b   :  { %v956_v52 = vsel %vm943_vm7, %v1151_v51, 0.0 }
0x138c   :  { %957 = vadd.xlane.f32.xlu0 %v956_v52 }
0x138e   :  { %v1153_v53 = vpop.eup %1152 }
0x138f   :  { %v959_v54 = vsel %vm943_vm7, %v1153_v53, 0.0 }
0x1390   :  { %960 = vadd.xlane.f32.xlu0 %v959_v54 }
0x1415   :  { %v958_v55 = vpop.xlane.xlu0 %957 }
0x1416   :  { %1154 = vrcp.f32 %v958_v55 }
0x1419   :  { %v961_v44 = vpop.xlane.xlu0 %960 }
0x141a   :  { %1156 = vrcp.f32 %v961_v44 }
0x1423   :  { %v1155_v56 = vpop.eup %1154 }
0x1424   :  { %v963_v57 = vmul.f32 %v1155_v56, %v1151_v51 }
0x1426   :  { %966 = vst.msk [vmem:[%s1448_s6] sm:$0xff] %vm943_vm7, %v963_v57 }
0x1427   :  { %v1157_v58 = vpop.eup %1156 }
0x1428   :  { %v965_v59 = vmul.f32 %v1157_v58, %v1153_v53 }
0x142a   :  { %967 = vst.msk [vmem:[%s1448_s6 + $0x8] sm:$0xff] %vm943_vm7, %v965_v59 }

</bundles_post_ra>
